<compile_context>
chip_gen: v6e
topology: v6e:2x2x1
jax: 0.10.0
libtpu: 0.0.40
codegen_flags: <defaults>
</compile_context>

<pallas_src>
import functools

import jax
import jax.numpy as jnp
from jax.experimental import pallas as pl
from jax.experimental.pallas import tpu as pltpu

_LANE = 128                      # TPU vreg lane width
_SUB = 8                         # TPU vreg sublane count (f32)
_VMEM_BUDGET = 40 * 1024 * 1024  # tile-footprint budget, safe on v5e/v6e/v7x
_VMEM_LIMIT = 48 * 1024 * 1024   # explicit scoped-VMEM limit passed to Mosaic


def _round_up(x, m):
    return pl.cdiv(x, m) * m


def _mlp_kernel(x_ref, w1_ref, b1_ref, w2_ref, b2_ref, o_ref, *, layer2_on_vpu):
    """Fused MLP forward for one batch tile (batch on the lane axis).

    x_ref : (D_in, TB)             VMEM, lane-dense batch tile
    w1_ref: (H, D_in)              VMEM  (torch layout: out x in)
    b1_ref: (H, 1)                 VMEM
    w2_ref: (H, 1) if layer2_on_vpu else (D_out, H)
    b2_ref: (D_out, 1)             VMEM
    o_ref : (D_out, TB)            VMEM, lane-dense output tile
    """
    x = x_ref[...]
    # hidden = relu(W1 @ x + b1); bias broadcasts across the lane (batch) axis.
    h = jnp.dot(w1_ref[...], x, preferred_element_type=jnp.float32) + b1_ref[...]
    h = jnp.maximum(h, 0.0)
    if layer2_on_vpu:
        # D_out == 1: a (1,H)@(H,TB) matmul would waste an MXU push/pop; do a VPU
        # broadcast-multiply and a sublane reduction over the H hidden rows instead.
        y = jnp.sum(h * w2_ref[...], axis=0, keepdims=True) + b2_ref[...]
    else:
        y = jnp.dot(w2_ref[...], h, preferred_element_type=jnp.float32) + b2_ref[...]
    o_ref[...] = y.astype(o_ref.dtype)


def _choose_tile(batch, d_in, h_dim, d_out, tile_b):
    """Pick the batch tile: big (amortize per-step overhead), VMEM-safe, >=2 steps."""
    b_ceil = _round_up(batch, _LANE)
    tile = min(_round_up(tile_b, _LANE), b_ceil)

    # VMEM cap: double-buffered x/out blocks + f32 hidden intermediates, all
    # sublane-padded (9 -> 16 rows, 1 -> 8 rows).
    bytes_per_col = 4 * (2 * _round_up(d_in, _SUB)
                         + 2 * _round_up(d_out, _SUB)
                         + 2 * _round_up(h_dim, _SUB))
    vmem_cap = max(_LANE, (_VMEM_BUDGET // bytes_per_col) // _LANE * _LANE)
    tile = min(tile, vmem_cap)

    # Keep the grid >= 2 steps when the batch allows it so the "parallel" batch axis
    # can be sharded across both TensorCores on v7x.
    lane_blocks = b_ceil // _LANE
    if lane_blocks >= 2:
        tile = min(tile, pl.cdiv(lane_blocks, 2) * _LANE)

    return max(tile, _LANE)


def _forward_feature_major_impl(x_fm, w1, b1, w2, b2, tile_b):
    """x_fm: (D_in, B) feature-major.  Returns (D_out, B).  No layout copies."""
    d_in, batch = x_fm.shape
    h_dim = w1.shape[0]
    d_out = w2.shape[0]

    tile = _choose_tile(batch, d_in, h_dim, d_out, tile_b)
    grid = (pl.cdiv(batch, tile),)   # last block may be partial: no jnp.pad needed

    layer2_on_vpu = d_out == 1
    w2_in = w2.T if layer2_on_vpu else w2   # (H, 1) for the VPU path, else (D_out, H)
    b1_col = b1.reshape(h_dim, 1)
    b2_col = b2.reshape(d_out, 1)

    # Kernel-visible traffic only; wrapper-side layout copies are not included here.
    cost = pl.CostEstimate(
        flops=2 * batch * (d_in * h_dim + h_dim * d_out),
        transcendentals=0,
        bytes_accessed=4 * (batch * (d_in + d_out)
                            + h_dim * d_in + h_dim + d_out * h_dim + d_out),
    )

    kernel = functools.partial(_mlp_kernel, layer2_on_vpu=layer2_on_vpu)

    out_fm = pl.pallas_call(
        kernel,
        out_shape=jax.ShapeDtypeStruct((d_out, batch), x_fm.dtype),
        grid_spec=pltpu.PrefetchScalarGridSpec(
            num_scalar_prefetch=0,
            grid=grid,
            in_specs=[
                pl.BlockSpec((d_in, tile), lambda i: (0, i)),     # x tile (lane-dense)
                pl.BlockSpec((h_dim, d_in), lambda i: (0, 0)),    # W1 (resident)
                pl.BlockSpec((h_dim, 1), lambda i: (0, 0)),       # b1
                pl.BlockSpec(w2_in.shape, lambda i: (0, 0)),      # W2 (resident)
                pl.BlockSpec((d_out, 1), lambda i: (0, 0)),       # b2
            ],
            out_specs=pl.BlockSpec((d_out, tile), lambda i: (0, i)),
        ),
        compiler_params=pltpu.CompilerParams(
            dimension_semantics=("parallel",),      # megacore-shardable batch axis
            vmem_limit_bytes=_VMEM_LIMIT,
        ),
        cost_estimate=cost,
    )(x_fm, w1, b1_col, w2_in, b2_col)
    return out_fm


@functools.partial(jax.jit, static_argnames=("tile_b",))
def nn_forward_feature_major(x_fm, w1, b1, w2, b2, *, tile_b=32768):
    """Preferred entry point: x_fm is (D_in, B); returns (D_out, B). Zero layout copies."""
    return _forward_feature_major_impl(x_fm, w1, b1, w2, b2, tile_b)


@functools.partial(jax.jit, static_argnames=("tile_b", "small_batch_threshold"))
def nn_forward(x, w1, b1, w2, b2, *, tile_b=32768, small_batch_threshold=256):
    """Torch-semantics entry point.

    x : (B, D_in)  -> returns (B, D_out)
    w1: (H, D_in), b1: (H,), w2: (D_out, H), b2: (D_out,)   (native torch layouts)
    """
    batch = x.shape[0]
    if batch < small_batch_threshold:
        # Tiny batches: kernel launch + 128-lane padding + transpose dominate; the
        # plain XLA fusion of a 9->9->1 MLP is already mem-bound optimal.
        h = jnp.maximum(x @ w1.T + b1, 0.0)
        return h @ w2.T + b2

    # One transpose to feature-major (extra HBM pass). Callers that can produce
    # feature-major data should use nn_forward_feature_major instead.
    out_fm = _forward_feature_major_impl(x.T, w1, b1, w2, b2, tile_b)
    # For D_out == 1 this final transpose is essentially free (a (1,B) -> (B,1) copy).
    return out_fm.T


def init_params(key, input_dim=9, inner_width=9, output_dim=1, depth=1):
    """torch.nn.Linear default init: U[-1/sqrt(fan_in), 1/sqrt(fan_in)], torch layouts."""
    assert depth == 1  # TODO(synk): generalize to depth>1 by chaining more fused hidden layers.
    k1, k2, k3, k4 = jax.random.split(key, 4)
    bound1 = 1.0 / jnp.sqrt(input_dim)
    w1 = jax.random.uniform(k1, (inner_width, input_dim), jnp.float32, -bound1, bound1)
    b1 = jax.random.uniform(k2, (inner_width,), jnp.float32, -bound1, bound1)
    bound2 = 1.0 / jnp.sqrt(inner_width)
    w2 = jax.random.uniform(k3, (output_dim, inner_width), jnp.float32, -bound2, bound2)
    b2 = jax.random.uniform(k4, (output_dim,), jnp.float32, -bound2, bound2)
    return w1, b1, w2, b2


def _ref_forward(x, w1, b1, w2, b2):
    return jnp.maximum(x @ w1.T + b1, 0.0) @ w2.T + b2


if __name__ == "__main__":
    key = jax.random.PRNGKey(0)
    k_x1, k_x2, k_x3, k_p1, k_p2 = jax.random.split(key, 5)
    INPUT_DIM, INNER_WIDTH, OUTPUT_DIM = 9, 9, 1

    # 1) Main kernel path (d_out=1, VPU second layer, multi-step grid).
    B1 = 2048
    x1 = jax.random.normal(k_x1, (B1, INPUT_DIM), jnp.float32)
    w1, b1, w2, b2 = init_params(k_p1, INPUT_DIM, INNER_WIDTH, OUTPUT_DIM, depth=1)
    out1 = jax.block_until_ready(nn_forward(x1, w1, b1, w2, b2))
    ref1 = _ref_forward(x1, w1, b1, w2, b2)
    assert out1.shape == (B1, OUTPUT_DIM), out1.shape
    assert jnp.allclose(out1, ref1, atol=1e-4, rtol=1e-4)

    # 2) Feature-major entry point (no layout copies), same data.
    out1_fm = jax.block_until_ready(nn_forward_feature_major(x1.T, w1, b1, w2, b2))
    assert out1_fm.shape == (OUTPUT_DIM, B1), out1_fm.shape
    assert jnp.allclose(out1_fm, ref1.T, atol=1e-4, rtol=1e-4)

    # 3) Partial last block (B not a multiple of 128 / tile) — masked OOB stores.
    B2 = 300
    x2 = jax.random.normal(k_x2, (B2, INPUT_DIM), jnp.float32)
    out2 = jax.block_until_ready(nn_forward(x2, w1, b1, w2, b2))
    ref2 = _ref_forward(x2, w1, b1, w2, b2)
    assert jnp.allclose(out2, ref2, atol=1e-4, rtol=1e-4)

    # 4) General output_dim (> 1) exercises the MXU second-layer branch.
    B3, D_OUT3 = 512, 3
    x3 = jax.random.normal(k_x3, (B3, INPUT_DIM), jnp.float32)
    w1b, b1b, w2b, b2b = init_params(k_p2, INPUT_DIM, INNER_WIDTH, D_OUT3, depth=1)
    out3 = jax.block_until_ready(nn_forward(x3, w1b, b1b, w2b, b2b))
    ref3 = _ref_forward(x3, w1b, b1b, w2b, b2b)
    assert out3.shape == (B3, D_OUT3), out3.shape
    assert jnp.allclose(out3, ref3, atol=1e-4, rtol=1e-4)

    # 5) Tiny-batch fast path (plain jnp, no kernel launch).
    x_small = x1[:8]
    out_small = jax.block_until_ready(nn_forward(x_small, w1, b1, w2, b2))
    assert jnp.allclose(out_small, _ref_forward(x_small, w1, b1, w2, b2),
                        atol=1e-5, rtol=1e-5)

    print("KERNEL_OK")
</pallas_src>

<mosaic_0001>
module attributes {stable_mosaic.version = 11 : i64} {
  func.func @_mlp_kernel(%arg0: i32, %arg1: memref<9x1024xf32, #tpu.memory_space<vmem>>, %arg2: memref<9x9xf32, #tpu.memory_space<vmem>>, %arg3: memref<9x1xf32, #tpu.memory_space<vmem>>, %arg4: memref<9x1xf32, #tpu.memory_space<vmem>>, %arg5: memref<1x1xf32, #tpu.memory_space<vmem>>, %arg6: memref<1x1024xf32, #tpu.memory_space<vmem>>) attributes {dimension_semantics = [#tpu.dimension_semantics<parallel>], iteration_bounds = array<i64: 2>, scalar_prefetch = 0 : i64, scratch_operands = 0 : i64, tpu.core_type = #tpu.core_type<tc>, window_params = [{transform_indices = @transform_0, window_bounds = array<i64: 9, 1024>}, {pipeline_mode = #tpu.pipeline_mode<synchronous>, transform_indices = @transform_1, window_bounds = array<i64: 9, 9>}, {pipeline_mode = #tpu.pipeline_mode<synchronous>, transform_indices = @transform_2, window_bounds = array<i64: 9, 1>}, {pipeline_mode = #tpu.pipeline_mode<synchronous>, transform_indices = @transform_3, window_bounds = array<i64: 9, 1>}, {pipeline_mode = #tpu.pipeline_mode<synchronous>, transform_indices = @transform_4, window_bounds = array<i64: 1, 1>}, {transform_indices = @transform_5, window_bounds = array<i64: 1, 1024>}]} {
    %c0 = arith.constant 0 : index
    %c0_0 = arith.constant 0 : index
    %0 = vector.load %arg1[%c0, %c0_0] : memref<9x1024xf32, #tpu.memory_space<vmem>>, vector<9x1024xf32>
    %c0_1 = arith.constant 0 : index
    %c0_2 = arith.constant 0 : index
    %1 = vector.load %arg2[%c0_1, %c0_2] : memref<9x9xf32, #tpu.memory_space<vmem>>, vector<9x9xf32>
    %cst = arith.constant dense<0.000000e+00> : vector<9x1024xf32>
    %2 = tpu.matmul %1, %0, %cst {dimension_numbers = #tpu.dot_dimension_numbers<[1], [0], [0], [1], [0, 0, 1, 1], [], []>} : vector<9x9xf32>, vector<9x1024xf32>, vector<9x1024xf32> -> vector<9x1024xf32>
    %c0_3 = arith.constant 0 : index
    %c0_4 = arith.constant 0 : index
    %3 = vector.load %arg3[%c0_3, %c0_4] : memref<9x1xf32, #tpu.memory_space<vmem>>, vector<9x1xf32>
    %4 = vector.broadcast %3 : vector<9x1xf32> to vector<9x1024xf32>
    %5 = arith.addf %2, %4 : vector<9x1024xf32>
    %cst_5 = arith.constant 0.000000e+00 : f32
    %6 = vector.broadcast %cst_5 : f32 to vector<9x1024xf32>
    %7 = arith.maximumf %5, %6 : vector<9x1024xf32>
    %c0_6 = arith.constant 0 : index
    %c0_7 = arith.constant 0 : index
    %8 = vector.load %arg4[%c0_6, %c0_7] : memref<9x1xf32, #tpu.memory_space<vmem>>, vector<9x1xf32>
    %9 = vector.broadcast %8 : vector<9x1xf32> to vector<9x1024xf32>
    %10 = arith.mulf %7, %9 : vector<9x1024xf32>
    %cst_8 = arith.constant dense<0.000000e+00> : vector<1024xf32>
    %11 = vector.multi_reduction <add>, %10, %cst_8 [0] : vector<9x1024xf32> to vector<1024xf32>
    %12 = vector.shape_cast %11 : vector<1024xf32> to vector<1x1024xf32>
    %c0_9 = arith.constant 0 : index
    %c0_10 = arith.constant 0 : index
    %13 = vector.load %arg5[%c0_9, %c0_10] : memref<1x1xf32, #tpu.memory_space<vmem>>, vector<1x1xf32>
    %14 = vector.broadcast %13 : vector<1x1xf32> to vector<1x1024xf32>
    %15 = arith.addf %12, %14 : vector<1x1024xf32>
    %c0_11 = arith.constant 0 : index
    %c0_12 = arith.constant 0 : index
    %16 = vector.load %arg6[%c0_11, %c0_12] : memref<1x1024xf32, #tpu.memory_space<vmem>>, vector<1x1024xf32>
    tpu.vector_store %arg6[%c0_11, %c0_12], %15 {strides = array<i32>} : memref<1x1024xf32, #tpu.memory_space<vmem>>, vector<1x1024xf32>,
    return
  }
  func.func @transform_0(%arg0: i32) -> (i32, i32) {
    %c0_i32 = arith.constant 0 : i32
    %c0_i32_0 = arith.constant 0 : i32
    return %c0_i32, %arg0 : i32, i32
  }
  func.func @transform_1(%arg0: i32) -> (i32, i32) {
    %c0_i32 = arith.constant 0 : i32
    %c0_i32_0 = arith.constant 0 : i32
    %c0_i32_1 = arith.constant 0 : i32
    return %c0_i32, %c0_i32_0 : i32, i32
  }
  func.func @transform_2(%arg0: i32) -> (i32, i32) {
    %c0_i32 = arith.constant 0 : i32
    %c0_i32_0 = arith.constant 0 : i32
    %c0_i32_1 = arith.constant 0 : i32
    return %c0_i32, %c0_i32_0 : i32, i32
  }
  func.func @transform_3(%arg0: i32) -> (i32, i32) {
    %c0_i32 = arith.constant 0 : i32
    %c0_i32_0 = arith.constant 0 : i32
    %c0_i32_1 = arith.constant 0 : i32
    return %c0_i32, %c0_i32_0 : i32, i32
  }
  func.func @transform_4(%arg0: i32) -> (i32, i32) {
    %c0_i32 = arith.constant 0 : i32
    %c0_i32_0 = arith.constant 0 : i32
    %c0_i32_1 = arith.constant 0 : i32
    return %c0_i32, %c0_i32_0 : i32, i32
  }
  func.func @transform_5(%arg0: i32) -> (i32, i32) {
    %c0_i32 = arith.constant 0 : i32
    %c0_i32_0 = arith.constant 0 : i32
    return %c0_i32, %arg0 : i32, i32
  }
}

</mosaic_0001>

<bundles_post_ra>
// kernel: nn_forward.1
= control target key start
LH: loop header
LB: loop body
LE: loop exit
PB: predicated region body
PF: predicated region fallthrough
CT: control target
= control target key end

     0   :  { %s1345_s0 = inlined_call_operand.hbm [shape: f32[9,2048], index: 0, kind: input, shape index: {}]   ;;  %s1346_s1 = inlined_call_operand.vmem [shape: f32[9,9], index: 1, kind: input, shape index: {}]   ;;  %s1347_s2 = inlined_call_operand.vmem [shape: f32[9,1], index: 2, kind: input, shape index: {}]   ;;  %s1348_s3 = inlined_call_operand.vmem [shape: f32[9,1], index: 3, kind: input, shape index: {}]   ;;  %s1349_s4 = inlined_call_operand.<no memory space> [shape: f32[1,1], index: 4, kind: input, shape index: {}]   ;;  %s1350_s5 = inlined_call_operand.hbm [shape: f32[1,2048], index: 5, kind: output, shape index: {}]  }
   0x1   :  { %v10_v0 = vstv %s1349_s4 }
   0x2   :  { %11 = vst [vmem:[#allocation2] sm:$0x1] %v10_v0 }
   0x3   :  { %12 = vsyncpa [#allocation4], 0 }
   0x4   :  { %14 = vsyncpa [#allocation4 + $0x1], 0 }
   0x5   :  { %15 = vsyncpa [#allocation5], 0 }
   0x6   :  { %17 = vsyncpa [#allocation5 + $0x1], 0  ;;  %s1108_s20 = smov 0   ;;  %s1110_s21 = smov 0  }
   0x7   :  { %s1112_s22 = smov 0   ;;  %s1114_s23 = smov 0  }
   0x8 LB: > { %s1129_s4 = sadd.s32 4294967295, %s1065_s23   ;;  %s887_s24 = sadd.s32 4294967294, %s1065_s23   ;;  %s1065_s23 = sphi %s1114_s23, %s1366_s23   ;;  %s1061_s22 = sphi %s1112_s22, %s1365_s22   ;;  %s1057_s21 = sphi %s1110_s21, %s1364_s21   ;;  %s1053_s20 = sphi %s1108_s20, %s1363_s20  }
   0x9   : > { %s1133_s25 = sadd.s32 1, %s1065_s23   ;;  %s30_s26 = sadd.s32 1, %s1061_s22 }
   0xa   : > { %s27_s27 = ssub.s32 %s1065_s23, %s1133_s25  ;;  %p37_p0 = scmp.ne.s32.totalorder %s1061_s22, %s1057_s21 }
   0xb   : > { %p28_p1 = scmp.eq.s32.totalorder %s27_s27, 0  ;;  %p38_p2 = scmp.eq.s32.totalorder %s1065_s23, 0 }
   0xc   : > { %p43_p3 = scmp.ne.s32.totalorder %s1057_s21, %s1053_s20  ;;  %p44_p4 = scmp.eq.s32.totalorder %s1129_s4, 0 }
   0xd   : > { %s1145_s28 = scalar_select %p28_p1, %s1061_s22, %s30_s26  }
   0xe   : > { %p1147_p5 = por %p38_p2, %p37_p0  ;;  %p1151_p6 = por %p44_p4, %p43_p3 }
   0xf   : > { %p151_p7 = scmp.eq.s32.totalorder %s1129_s4, 1  ;;  %p157_p8 = scmp.eq.s32.totalorder %s887_s24, 1 }
  0x10   : > { %s1354_s30 = scalar_select %p1151_p6, 1, 0 }
  0x11   : > { %p931_p10 = scmp.lt.s32.totalorder %s1065_s23, 2  ;;  %p1158_p11 = por %p151_p7, %p37_p0 }
  0x12   : > { %p1162_p12 = por %p157_p8, %p43_p3  ;;  %s189_s8 = sand.u32 1, %s1061_s22  }
  0x13   : > { %s1355_s6 = scalar_select %p1158_p11, 1, 0 }
  0x14   : > { %s1356_s7 = scalar_select %p1162_p12, 1, 0 }
  0x15   : > { %s917_s9 = sshll.u32 %s1065_s23, 10  ;;  %s890_s10 = sshll.u32 %s189_s8, 7 }
  0x16   : > { %s1171_s13 = scalar_lea.hbm %s1345_s0, %s917_s9  ;;  %s193_s14 = scalar_lea.vmem [#allocation3], %s890_s10 }
  0x17   : > { %s200_s15 = sshll.u32 %s193_s14, 4  ;;  %p1175_p13 = pnand %p931_p10, %p1147_p5  ;;  %s1179_s15 = int_to_ptr.vmem [resolvable:$true] %s200_s15 }
  0x18   : > { %s1182_s17 = scalar_lea.sflag [#allocation4], %s189_s8  ;;  %s973_s18 = scalar_lea.hbm %s1171_s13, 2048 }
  0x19   : > { %p974_p1 = scmp.ne.s32.totalorder %s1171_s13, %s973_s18  ;;  %p975_p2 = pneg %p1175_p13 }
  0x1a   : > { %s978_s26 = scalar_lea.hbm %s1345_s0, 4096  ;;  %p979_p5 = scmp.lt.s32.totalorder %s1171_s13, %s1345_s0 }
  0x1b   : > { %p976_p3 = pnand %p975_p2, %p974_p1  ;;  %p980_p7 = scmp.lt.s32.totalorder %s978_s26, %s973_s18 }
  0x1d   : > { %p977_p4 = pneg %p976_p3  ;;  %p981_p8 = por %p980_p7, %p979_p5 }
  0x1f   : > { %p982_p10 = pnand %p981_p8, %p977_p4 }
  0x21   : > { %985 = shalt.err (!%p982_p10)
}
  0x22   : > { %s986_s8 = scalar_lea.vmem %s1179_s15, 2048  ;;  %s1067_s9 = smov [#allocation3]  }
  0x23   : > { %p987_p9 = scmp.ne.s32.totalorder %s1179_s15, %s986_s8  ;;  %s991_s10 = sshll.u32 %s1067_s9, 4  ;;  %s992_s10 = int_to_ptr.vmem [resolvable:$false] %s991_s10 }
  0x24   : > { %s993_s11 = scalar_lea.vmem %s992_s10, 4096  ;;  %p994_p3 = scmp.lt.s32.totalorder %s1179_s15, %s992_s10 }
  0x25   : > { %p989_p0 = pnand %p987_p9, %p975_p2  ;;  %p995_p12 = scmp.lt.s32.totalorder %s993_s11, %s986_s8 }
  0x27   : > { %p990_p1 = pneg %p989_p0  ;;  %p996_p11 = por %p995_p12, %p994_p3 }
  0x29   : > { %p997_p6 = pnand %p996_p11, %p990_p1 }
  0x2b   : > { %1000 = shalt.err (!%p997_p6)
}
  0x2c   : > { %s1068_s12 = smov 2048   ;;  %s1069_s14 = smov 1024  }
  0x2d   : > { %s1070_s18 = smov 64   ;;  %p208_p9 = scmp.lt.s32.totalorder %s1065_s23, 3 }
  0x2e   : > { %926 = dma.hbm_to_vmem [thread:$0]  (!%p1175_p13), %s1171_s13, 2048, %s1179_s15, %s1182_s17, %s1068_s12, %s1069_s14, %s1070_s18  }
  0x2f   : > { %p1358_p0 = scmp.ge.s32.totalorder %s1065_s23, 1 }
  0x31   : > { %p209_p2 = pnand %p1358_p0, %p208_p9 }
  0x32   : > { %s1207_s19 = sand.u32 (!%p209_p2), 1, %s1057_s21   ;;  %p1359_p6 = scmp.ne.s32.totalorder (!%p209_p2), %s1354_s30, 0 }
  0x33   : > { %212 = sbr.rel (%p209_p2) target bundleno = 321 (0x141), region = 40  ;;  %s894_s24 = sshll.u32 (!%p209_p2), %s1207_s19, 7 }
  0x34   : > { %s215_s26 = scalar_lea.sflag (!%p209_p2), [#allocation4], %s1207_s19  ;;  %s1211_s27 = scalar_lea.vmem (!%p209_p2), [#allocation3], %s894_s24 }
  0x38   : > { %1044 = dma.done.wait (%p1359_p6), %s215_s26, 2048  }
  0x39   : > { %1046 = vsyncadd (%p1359_p6), %s215_s26, 4294965248  ;;  %v1071_v1 = vmov 0.0   ;;  %v1072_v2 = vmov 0   ;;  %vm284_vm0 = vcmask 1040384   ;;  %v256_v3 = vld [vmem:[%s1211_s27 + $0x48] sm:$0x1]  ;;  %v731_v49 = vlaneseq }
  0x3a   : > { %373 = vmatprep.mubr.f32.mxu0 %v1071_v1  ;;  %450 = vmatprep.mubr.f32.mxu1 %v1071_v1  ;;  %v258_v4 = vld [vmem:[%s1211_s27 + $0x58] sm:$0x1]  ;;  %v255_v5 = vld [vmem:[%s1211_s27 + $0x40] sm:$0x1]  ;;  %v257_v6 = vld [vmem:[%s1211_s27 + $0x50] sm:$0x1] }
  0x3b   : > { %971 = vset.pattern.permute.xlu0 %v1072_v2  ;;  %972 = vset.pattern.permute.xlu1 %v1072_v2  ;;  %v248_v7 = vld [vmem:[%s1211_s27 + $0x8] sm:$0xff]  ;;  %v250_v8 = vld [vmem:[%s1211_s27 + $0x18] sm:$0xff]  ;;  %v247_v9 = vld [vmem:[%s1211_s27] sm:$0xff]  ;;  %vm277_vm1 = vcmask 72704   ;;  %s895_s18 = sshll.u32 %s1207_s19, 3  ;;  %s918_s24 = sshll.u32 %s1129_s4, 7 }
  0x3c   : > { %896 = vmatprep.subr.msk.mxu0 %vm284_vm0, %v256_v3  ;;  %900 = vmatprep.subr.msk.mxu1 %vm284_vm0, %v258_v4  ;;  %v249_v10 = vld [vmem:[%s1211_s27 + $0x10] sm:$0xff]  ;;  %v263_v11 = vld [vmem:[%s1346_s1] sm:$0xff]  ;;  %v260_v12 = vld [vmem:[%s1211_s27 + $0x68] sm:$0x1]  ;;  %v1284_v4 = vshrl.u32 %v731_v49, 7  ;;  %s244_s26 = scalar_lea.vmem [#allocation6], %s895_s18  ;;  %s815_s15 = scalar_lea.hbm %s1350_s5, %s918_s24 }
  0x3d   : > { %897 = vmatpush1.msk.msra.mxu0 %vm284_vm0, %v255_v5  ;;  %901 = vmatpush1.msk.msra.mxu1 %vm284_vm0, %v257_v6  ;;  %v262_v13 = vld [vmem:[%s1211_s27 + $0x78] sm:$0x1]  ;;  %v259_v14 = vld [vmem:[%s1211_s27 + $0x60] sm:$0x1]  ;;  %v261_v15 = vld [vmem:[%s1211_s27 + $0x70] sm:$0x1] }
  0x3e   : > { %339 = vmatprep.subr.mxu0 %v248_v7  ;;  %416 = vmatprep.subr.mxu1 %v250_v8  ;;  %v264_v16 = vld [vmem:[%s1346_s1 + $0x8] sm:$0x1]  ;;  %v252_v17 = vld [vmem:[%s1211_s27 + $0x28] sm:$0xff]  ;;  %v254_v18 = vld [vmem:[%s1211_s27 + $0x38] sm:$0xff]  ;;  %s803_s16 = scalar_lea.sflag [#allocation5], %s1207_s19  ;;  %p1360_p12 = scmp.ne.s32.totalorder %s1355_s6, 0 }
  0x3f   : > { %340 = vmatpush1.msra.mxu0 %v247_v9  ;;  %417 = vmatpush1.msra.mxu1 %v249_v10  ;;  %v251_v19 = vld [vmem:[%s1211_s27 + $0x20] sm:$0xff]  ;;  %v253_v20 = vld [vmem:[%s1211_s27 + $0x30] sm:$0xff]  ;;  %v725_v25 = vld [vmem:[#allocation2] sm:$0x1]  ;;  %s817_s27 = sshll.u32 %s244_s26, 4  ;;  %s1074_s29 = smov [#allocation6]   ;;  %s818_s27 = int_to_ptr.vmem [resolvable:$true] %s817_s27 }
  0x40   : > { %898 = vmatmul.mubr.msk.f32.vlgmr.msra.gmra.mxu0 %vm277_vm1, %v263_v11  ;;  %902 = vmatmul.mubr.msk.f32.vlgmr.msra.gmra.mxu1 %vm277_vm1, %v263_v11  ;;  %v266_v21 = vld [vmem:[%s1347_s2 + $0x8] sm:$0x1]  ;;  %v265_v23 = vld [vmem:[%s1347_s2] sm:$0xff]  ;;  %s1001_s17 = scalar_lea.vmem %s818_s27, 128  ;;  %s1005_s8 = sshll.u32 %s1074_s29, 4  ;;  %s1006_s8 = int_to_ptr.vmem [resolvable:$false] %s1005_s8 }
  0x41   : > { %904 = vmatprep.subr.msk.mxu0 %vm284_vm0, %v260_v12  ;;  %908 = vmatprep.subr.msk.mxu1 %vm284_vm0, %v262_v13  ;;  %v634_v22 = vld [vmem:[%s1348_s3 + $0x8] sm:$0x1]  ;;  %v633_v24 = vld [vmem:[%s1348_s3] sm:$0xff]  ;;  %p1002_p11 = scmp.ne.s32.totalorder %s818_s27, %s1001_s17  ;;  %s1007_s4 = scalar_lea.vmem %s1006_s8, 256 }
  0x42   : > { %905 = vmatpush1.msk.msra.mxu0 %vm284_vm0, %v259_v14  ;;  %909 = vmatpush1.msk.msra.mxu1 %vm284_vm0, %v261_v15  ;;  %p1008_p5 = scmp.lt.s32.totalorder %s818_s27, %s1006_s8  ;;  %p1009_p7 = scmp.lt.s32.totalorder %s1007_s4, %s1001_s17 }
  0x43   : > { %379 = vmatprep.mubr.f32.mxu0 %v1071_v1  ;;  %456 = vmatprep.mubr.f32.mxu1 %v1071_v1  ;;  %p1003_p13 = pnand %p1002_p11, %p1360_p12 }
  0x44   : > { %899 = vmatmul.mubr.msk.f32.gmra.mxu0 %vm277_vm1, %v264_v16  ;;  %903 = vmatmul.mubr.msk.f32.gmra.mxu1 %vm277_vm1, %v264_v16  ;;  %p1010_p8 = por %p1009_p7, %p1008_p5 }
  0x45   : > { %493 = vmatprep.subr.mxu0 %v252_v17  ;;  %570 = vmatprep.subr.mxu1 %v254_v18  ;;  %p1004_p4 = pneg %p1003_p13 }
  0x46   : > { %494 = vmatpush1.msra.mxu0 %v251_v19  ;;  %571 = vmatpush1.msra.mxu1 %v253_v20 }
  0x47   : > { %527 = vmatprep.mubr.f32.mxu0 %v1071_v1  ;;  %604 = vmatprep.mubr.f32.mxu1 %v1071_v1  ;;  %p1011_p10 = pnand %p1010_p8, %p1004_p4 }
  0x48   : > { %906 = vmatmul.mubr.msk.f32.vlgmr.msra.gmra.mxu0 %vm277_vm1, %v263_v11  ;;  %910 = vmatmul.mubr.msk.f32.vlgmr.msra.gmra.mxu1 %vm277_vm1, %v263_v11 }
  0x49   : > { %533 = vmatprep.mubr.f32.mxu0 %v1071_v1  ;;  %610 = vmatprep.mubr.f32.mxu1 %v1071_v1 }
  0x4a   : > { %274 = vperm.xlu0 %971, %v266_v21   ;;  %642 = vperm.xlu1 %972, %v634_v22  }
  0x4c   : > { %907 = vmatmul.mubr.msk.f32.gmra.mxu0 %vm277_vm1, %v264_v16  ;;  %911 = vmatmul.mubr.msk.f32.gmra.mxu1 %vm277_vm1, %v264_v16 }
  0x4e   : > { %269 = vperm.xlu0 %971, %v265_v23   ;;  %637 = vperm.xlu1 %972, %v633_v24  }
  0x52   : > { %728 = vperm.xlu0 %971, %v725_v25  }
  0xc5   : > { %v1267_v26 = vpop.permute.xlu0 %274  ;;  %v1269_v30 = vpop.permute.xlu1 %642 }
  0xc9   : > { %v270_v27 = vpop.permute.xlu0 %269  ;;  %v1273_v47 = vpop.permute.xlu1 %637 }
 0x100   : > { %v375_v28 = vpop.f32.mrf.mxu0  ;;  %v452_v29 = vpop.f32.mrf.mxu1 }
 0x101   : > { %v376_v33 = vadd.f32 %v375_v28, %v270_v27  ;;  %v453_v34 = vadd.f32 %v452_v29, %v270_v27 }
 0x102   : > { %v377_v31 = vpop.f32.mrf.mxu0  ;;  %v454_v32 = vpop.f32.mrf.mxu1 }
 0x103   : > { %v378_v35 = vadd.f32 %v377_v31, %v270_v27  ;;  %v455_v36 = vadd.f32 %v454_v32, %v270_v27  ;;  %v617_v41 = vmax.f32 %v376_v33, 0.0  ;;  %v619_v42 = vmax.f32 %v453_v34, 0.0 }
 0x104   : > { %v381_v37 = vpop.f32.mrf.mxu0  ;;  %v458_v38 = vpop.f32.mrf.mxu1 }
 0x105   : > { %v382_v39 = vadd.f32 %v381_v37, %v1267_v26  ;;  %v459_v40 = vadd.f32 %v458_v38, %v1267_v26  ;;  %v618_v50 = vmax.f32 %v378_v35, 0.0  ;;  %v620_v51 = vmax.f32 %v455_v36, 0.0 }
 0x106   : > { %v383_v43 = vpop.f32.mrf.mxu0  ;;  %v460_v44 = vpop.f32.mrf.mxu1  ;;  %v645_v59 = vmul.f32 %v1273_v47, %v617_v41  ;;  %v647_v60 = vmul.f32 %v1273_v47, %v619_v42 }
 0x107   : > { %v625_v45 = vmax.f32 %v382_v39, 0.0  ;;  %v627_v46 = vmax.f32 %v459_v40, 0.0  ;;  %v384_v48 = vadd.f32 %v383_v43, %v1267_v26  ;;  %v461_v52 = vadd.f32 %v460_v44, %v1267_v26 }
 0x108   : > { %v529_v53 = vpop.f32.mrf.mxu0  ;;  %v606_v54 = vpop.f32.mrf.mxu1  ;;  %v646_v7 = vmul.f32 %v1273_v47, %v618_v50  ;;  %v648_v12 = vmul.f32 %v1273_v47, %v620_v51 }
 0x109   : > { %v653_v55 = vmul.f32 %v1269_v30, %v625_v45  ;;  %v655_v56 = vmul.f32 %v1269_v30, %v627_v46  ;;  %v626_v57 = vmax.f32 %v384_v48, 0.0  ;;  %v530_v58 = vadd.f32 %v529_v53, %v270_v27 }
 0x10a   : > { %v628_v61 = vmax.f32 %v461_v52, 0.0  ;;  %v607_v62 = vadd.f32 %v606_v54, %v270_v27  ;;  %v531_v63 = vpop.f32.mrf.mxu0  ;;  %v608_v0 = vpop.f32.mrf.mxu1 }
 0x10b   : > { %v661_v1 = vsel %vm284_vm0, %v653_v55, 0.0  ;;  %v677_v2 = vsel %vm284_vm0, %v655_v56, 0.0  ;;  %v654_v3 = vmul.f32 %v1269_v30, %v626_v57  ;;  %v621_v13 = vmax.f32 %v530_v58, 0.0 }
 0x10c   : > { %v662_v5 = vadd.f32 %v661_v1, %v645_v59  ;;  %v678_v6 = vadd.f32 %v677_v2, %v647_v60  ;;  %v656_v8 = vmul.f32 %v1269_v30, %v628_v61  ;;  %v535_v9 = vpop.f32.mrf.mxu0  ;;  %v612_v10 = vpop.f32.mrf.mxu1  ;;  %v623_v14 = vmax.f32 %v607_v62, 0.0 }
 0x10d   : > { %v669_v11 = vsel %vm284_vm0, %v654_v3, 0.0  ;;  %v532_v20 = vadd.f32 %v531_v63, %v270_v27  ;;  %v609_v21 = vadd.f32 %v608_v0, %v270_v27  ;;  %v536_v25 = vadd.f32 %v535_v9, %v1267_v26  ;;  %v729_v9 = vpop.permute.xlu0 %728 }
 0x10e   : > { %v663_v15 = vrot.slane %v662_v5, 4  ;;  %v679_v16 = vrot.slane %v678_v6, 4  ;;  %v670_v17 = vadd.f32 %v669_v11, %v646_v7  ;;  %v685_v18 = vsel %vm284_vm0, %v656_v8, 0.0  ;;  %v537_v28 = vpop.f32.mrf.mxu0  ;;  %v614_v29 = vpop.f32.mrf.mxu1 }
 0x10f   : > { %v686_v19 = vadd.f32 %v685_v18, %v648_v12  ;;  %v649_v32 = vmul.f32 %v1273_v47, %v621_v13  ;;  %v651_v33 = vmul.f32 %v1273_v47, %v623_v14  ;;  %v613_v34 = vadd.f32 %v612_v10, %v1267_v26 }
 0x110   : > { %v664_v22 = vadd.f32 %v663_v15, %v662_v5  ;;  %v680_v23 = vadd.f32 %v679_v16, %v678_v6  ;;  %v671_v24 = vrot.slane %v670_v17, 4  ;;  %v629_v38 = vmax.f32 %v536_v25, 0.0 }
 0x111   : > { %v687_v31 = vrot.slane %v686_v19, 4  ;;  %v631_v27 = vmax.f32 %v613_v34, 0.0  ;;  %v538_v40 = vadd.f32 %v537_v28, %v1267_v26  ;;  %v615_v41 = vadd.f32 %v614_v29, %v1267_v26 }
 0x112   : > { %v665_v35 = vrot.slane %v664_v22, 2  ;;  %v681_v36 = vrot.slane %v680_v23, 2  ;;  %v672_v37 = vadd.f32 %v671_v24, %v670_v17  ;;  %v622_v43 = vmax.f32 %v532_v20, 0.0 }
 0x113   : > { %v688_v39 = vadd.f32 %v687_v31, %v686_v19  ;;  %v624_v44 = vmax.f32 %v609_v21, 0.0  ;;  %v657_v45 = vmul.f32 %v1269_v30, %v629_v38  ;;  %v659_v48 = vmul.f32 %v1269_v30, %v631_v27 }
 0x114   : > { %v673_v42 = vrot.slane %v672_v37, 2  ;;  %v630_v49 = vmax.f32 %v538_v40, 0.0  ;;  %v632_v50 = vmax.f32 %v615_v41, 0.0  ;;  %v666_v51 = vadd.f32 %v665_v35, %v664_v22 }
 0x115   : > { %v689_v46 = vrot.slane %v688_v39, 2  ;;  %v682_v52 = vadd.f32 %v681_v36, %v680_v23  ;;  %v693_v54 = vsel %vm284_vm0, %v657_v45, 0.0  ;;  %v709_v57 = vsel %vm284_vm0, %v659_v48, 0.0 }
 0x116   : > { %v674_v53 = vadd.f32 %v673_v42, %v672_v37  ;;  %v694_v56 = vadd.f32 %v693_v54, %v649_v32  ;;  %v658_v26 = vmul.f32 %v1269_v30, %v630_v49  ;;  %v650_v58 = vmul.f32 %v1273_v47, %v622_v43 }
 0x117   : > { %v690_v55 = vadd.f32 %v689_v46, %v688_v39  ;;  %v652_v59 = vmul.f32 %v1273_v47, %v624_v44  ;;  %v710_v60 = vadd.f32 %v709_v57, %v651_v33  ;;  %v660_v61 = vmul.f32 %v1269_v30, %v632_v50 }
 0x118   : > { %v675_v62 = vrot.slane %v674_v53, 1  ;;  %v695_v0 = vrot.slane %v694_v56, 4  ;;  %v701_v1 = vsel %vm284_vm0, %v658_v26, 0.0  ;;  %v733_v2 = vsub.s32 0, %v1284_v4 }
 0x119   : > { %v691_v63 = vrot.slane %v690_v55, 1  ;;  %v711_v3 = vrot.slane %v710_v60, 4  ;;  %v702_v5 = vadd.f32 %v701_v1, %v650_v58  ;;  %v717_v6 = vsel %vm284_vm0, %v660_v61, 0.0 }
 0x11a   : > { %v667_v7 = vrot.slane %v666_v51, 1  ;;  %v683_v8 = vrot.slane %v682_v52, 1  ;;  %v696_v10 = vadd.f32 %v695_v0, %v694_v56  ;;  %v718_v11 = vadd.f32 %v717_v6, %v652_v59 }
 0x11b   : > { %v1073_v47 = vmov 1966171168   ;;  %v712_v13 = vadd.f32 %v711_v3, %v710_v60  ;;  %v703_v30 = vrot.slane %v702_v5, 4  ;;  %v676_v14 = vadd.f32 %v675_v62, %v674_v53 }
 0x11c   : > { %v756_v12 = vunpack.c.l.s4 %v1073_v47  ;;  %v692_v15 = vadd.f32 %v691_v63, %v690_v55  ;;  %v697_v16 = vrot.slane %v696_v10, 2  ;;  %v719_v17 = vrot.slane %v718_v11, 4 }
 0x11d   : > { %v734_v18 = vrot.slane %v729_v9, %v733_v2  ;;  %v713_v19 = vrot.slane %v712_v13, 2  ;;  %v704_v20 = vadd.f32 %v703_v30, %v702_v5  ;;  %v668_v23 = vadd.f32 %v667_v7, %v666_v51 }
 0x11e   : > { %v698_v21 = vadd.f32 %v697_v16, %v696_v10  ;;  %v720_v22 = vadd.f32 %v719_v17, %v718_v11  ;;  %v684_v24 = vadd.f32 %v683_v8, %v682_v52  ;;  %v757_v25 = vunpack.c.0.s8 %v756_v12 }
 0x11f   : > { %v714_v28 = vadd.f32 %v713_v19, %v712_v13  ;;  %v705_v29 = vrot.slane %v704_v20, 2  ;;  %v736_v33 = vadd.f32 %v734_v18, %v676_v14  ;;  %v738_v34 = vadd.f32 %v734_v18, %v692_v15 }
 0x120   : > { %v699_v31 = vrot.slane %v698_v21, 1  ;;  %v721_v32 = vrot.slane %v720_v22, 2  ;;  %v735_v38 = vadd.f32 %v734_v18, %v668_v23  ;;  %v737_v39 = vadd.f32 %v734_v18, %v684_v24 }
 0x121   : > { %v715_v35 = vrot.slane %v714_v28, 1  ;;  %v706_v36 = vadd.f32 %v705_v29, %v704_v20  ;;  %v760_v27 = vsub.s32 %v757_v25, %v1284_v4 }
 0x122   : > { %v722_v37 = vadd.f32 %v721_v32, %v720_v22  ;;  %v700_v40 = vadd.f32 %v699_v31, %v698_v21  ;;  %v751_v44 = vcombine.low %v735_v38, %v736_v33  ;;  %v752_v45 = vcombine.low %v737_v39, %v738_v34 }
 0x123   : > { %v707_v41 = vrot.slane %v706_v36, 1  ;;  %v716_v42 = vadd.f32 %v715_v35, %v714_v28 }
 0x124   : > { %v723_v43 = vrot.slane %v722_v37, 1  ;;  %v739_v49 = vadd.f32 %v734_v18, %v700_v40  ;;  %v761_v53 = vrot.slane %v751_v44, %v760_v27  ;;  %v768_v54 = vrot.slane %v752_v45, %v760_v27 }
 0x125   : > { %v708_v46 = vadd.f32 %v707_v41, %v706_v36  ;;  %v741_v51 = vadd.f32 %v734_v18, %v716_v42 }
 0x126   : > { %v724_v48 = vadd.f32 %v723_v43, %v722_v37  ;;  %v783_v26 = vcombine.low %v761_v53, %v768_v54 }
 0x127   : > { %v740_v50 = vadd.f32 %v734_v18, %v708_v46 }
 0x128   : > { %v742_v52 = vadd.f32 %v734_v18, %v724_v48  ;;  %v791_v59 = vrot.slane %v783_v26, %v760_v27 }
 0x129   : > { %v753_v55 = vcombine.low %v739_v49, %v740_v50 }
 0x12a   : > { %v754_v4 = vcombine.low %v741_v51, %v742_v52 }
 0x12b   : > { %v775_v56 = vrot.slane %v753_v55, %v760_v27 }
 0x12c   : > { %v782_v57 = vrot.slane %v754_v4, %v760_v27 }
 0x12e   : > { %v784_v58 = vcombine.low %v775_v56, %v782_v57 }
 0x130   : > { %v798_v60 = vrot.slane %v784_v58, %v760_v27 }
 0x132   : > { %v799_v61 = vcombine.low %v791_v59, %v798_v60 }
 0x134   : > { %801 = vst [vmem:[%s244_s26] sm:$0xff] %v799_v61 }
 0x135   : > { %1014 = shalt.err (!%p1011_p10)
}
 0x136   : > { %s1015_s9 = scalar_lea.hbm %s815_s15, 128  ;;  %s1019_s11 = scalar_lea.hbm %s1350_s5, 256 }
 0x137   : > { %p1016_p1 = scmp.ne.s32.totalorder %s815_s15, %s1015_s9  ;;  %p1020_p0 = scmp.lt.s32.totalorder %s815_s15, %s1350_s5 }
 0x138   : > { %p1021_p2 = scmp.lt.s32.totalorder %s1019_s11, %s1015_s9 }
 0x139   : > { %p1017_p3 = pnand %p1016_p1, %p1360_p12 }
 0x13a   : > { %p1022_p6 = por %p1021_p2, %p1020_p0 }
 0x13b   : > { %p1018_p9 = pneg %p1017_p3 }
 0x13d   : > { %p1023_p11 = pnand %p1022_p6, %p1018_p9 }
 0x13f   : > { %1026 = shalt.err (!%p1023_p11)
}
 0x140   : > { %921 = dma.vmem_to_hbm [thread:$0]  (%p1360_p12), %s818_s27, 128, %s815_s15, %s803_s16  }
 0x141 PF: > { %s829_s18 = sand.u32 1, %s1053_s20   ;;  %p1361_p13 = scmp.ne.s32.totalorder %s1356_s7, 0 }
 0x142   : > { %p1362_p4 = scmp.ge.s32.totalorder %s1065_s23, 2  ;;  %s830_s24 = scalar_lea.sflag [#allocation5], %s829_s18 }
 0x144   : > { %p928_p5 = pnand %p1362_p4, %p1361_p13 }
 0x146   : > { %p929_p7 = pneg %p928_p5 }
 0x148   : > { %1048 = dma.done.wait (%p929_p7), %s830_s24, 128  }
 0x149   : > { %1050 = vsyncadd (%p929_p7), %s830_s24, 4294967168  ;;  %p20_p8 = scmp.ge.s32.totalorder %s1133_s25, 4   ;;  %s1363_s20 = smov %s1057_s21 }
 0x14a   : > { %s1364_s21 = smov %s1061_s22  ;;  %s1365_s22 = smov %s1145_s28 }
 0x14b   : > { %s1366_s23 = smov %s1133_s25  ;;  %22 = sbr.rel (!%p20_p8) target bundleno = 8 (0x8), region = 85 }
 0x150   :  { %835 = vsyncpa [#allocation4], 1 }
 0x151   :  { %837 = vsyncpa [#allocation4 + $0x1], 1 }
 0x152   :  { %838 = vsyncpa [#allocation5], 1 }
 0x153   :  { %840 = vsyncpa [#allocation5 + $0x1], 1 }

</bundles_post_ra>
